<compile_context>
chip_gen: v7x
topology: tpu7x:2x2x1
jax: 0.10.0
libtpu: 0.0.40
codegen_flags: <defaults>
</compile_context>

<pallas_src>
import functools

import jax
import jax.numpy as jnp
from jax import lax
from jax.experimental import pallas as pl
from jax.experimental.pallas import tpu as pltpu


# ---------------------------------------------------------------------------
# Fast path: stride == 1, channel-major, single fused K = KH*KW*Cin matmul.
# ---------------------------------------------------------------------------
def _lwgated_kernel_s1(x_ref, w_ref, b_ref, o_ref, patch_ref, *,
                       KH, KW, Wp, Cout, mxu_dtype):
    """One batch element per grid step.

    x_ref:     (1, Cin, Hp*Wp)      spatially padded, flattened input (VMEM)
    w_ref:     (Cout+1, KH*KW*Cin)  feature weights ++ mask weights (tap-major rows)
    b_ref:     (Cout+1, 1)          feature bias ++ mask bias
    o_ref:     (1, Cout, L)         gated output, L = (Ho-1)*Wp + Wo (overshoot rows)
    patch_ref: (KH*KW*Cin, L)       VMEM scratch holding the im2col patch
    """
    Cin = x_ref.shape[1]
    L = patch_ref.shape[1]

    # Assemble the im2col patch: for stride 1, tap (kh, kw) is the contiguous flat
    # slice of the padded image starting at kh*Wp + kw ("row-overshoot" trick), so
    # each tap is just a lane-offset load stored at a fixed sublane offset.
    for kh in range(KH):
        for kw in range(KW):
            t = kh * KW + kw
            off = kh * Wp + kw
            patch_ref[t * Cin:(t + 1) * Cin, :] = (
                x_ref[0, :, off:off + L].astype(patch_ref.dtype))

    w = w_ref[...]
    patch = patch_ref[...]
    if mxu_dtype is not None:  # bf16 operands on v6e/v7x, f32 accumulation
        w = w.astype(mxu_dtype)
        patch = patch.astype(mxu_dtype)

    # Single fused matmul: (Cout+1, K) @ (K, L). Spatial (L) is the MXU-N / lane dim.
    acc = jnp.dot(w, patch, preferred_element_type=jnp.float32)
    acc = acc + b_ref[...]                       # (Cout+1, 1) broadcast over lanes

    feat = acc[:Cout, :]                         # (Cout, L)
    gate = jax.nn.sigmoid(acc[Cout:Cout + 1, :])  # (1, L) -> sublane broadcast
    o_ref[0] = (feat * gate).astype(o_ref.dtype)


# ---------------------------------------------------------------------------
# General fallback (stride > 1): previously validated spatial-major formulation.
# ---------------------------------------------------------------------------
def _lwgated_kernel_general(x_ref, w_ref, b_ref, o_ref, *,
                            KH, KW, stride, Ho, Wo, Cout):
    Cin = x_ref.shape[3]
    x = x_ref[0]  # (Hp, Wp, Cin)
    acc = jnp.zeros((Ho * Wo, Cout + 1), jnp.float32)
    for kh in range(KH):
        for kw in range(KW):
            patch = lax.slice(
                x,
                (kh, kw, 0),
                (kh + stride * (Ho - 1) + 1, kw + stride * (Wo - 1) + 1, Cin),
                (stride, stride, 1),
            )
            acc = acc + jnp.dot(patch.reshape(Ho * Wo, Cin), w_ref[kh, kw],
                                preferred_element_type=jnp.float32)
    acc = acc + b_ref[...].astype(jnp.float32)
    feat = acc[:, :Cout]
    mask = jax.nn.sigmoid(acc[:, Cout:Cout + 1])
    o_ref[0] = (feat * mask).reshape(Ho, Wo, Cout).astype(o_ref.dtype)


def _lwgated_conv2d_general(x_nchw, w_feat, b_feat, w_mask, b_mask, *, stride, pad):
    # TODO(synk): stride>1 path keeps the original (validated) spatial-major layout;
    # it is correct but not lane-optimized (strided in-kernel slices, Ct on lanes).
    N, Cin, H, W = x_nchw.shape
    Cout, _, KH, KW = w_feat.shape
    Ho = (H + 2 * pad - KH) // stride + 1
    Wo = (W + 2 * pad - KW) // stride + 1
    Hp, Wp = H + 2 * pad, W + 2 * pad
    Ct = Cout + 1

    x = jnp.transpose(x_nchw, (0, 2, 3, 1))
    x = jnp.pad(x, ((0, 0), (pad, pad), (pad, pad), (0, 0)))
    wf = jnp.transpose(w_feat, (2, 3, 1, 0))
    wm = jnp.transpose(w_mask, (2, 3, 1, 0))
    w = jnp.concatenate([wf, wm], axis=-1)
    b = jnp.concatenate([b_feat, b_mask])[None, :]

    kernel = functools.partial(_lwgated_kernel_general, KH=KH, KW=KW,
                               stride=stride, Ho=Ho, Wo=Wo, Cout=Cout)
    out_nhwc = pl.pallas_call(
        kernel,
        out_shape=jax.ShapeDtypeStruct((N, Ho, Wo, Cout), x_nchw.dtype),
        grid=(N,),
        in_specs=[
            pl.BlockSpec((1, Hp, Wp, Cin), lambda n: (n, 0, 0, 0)),
            pl.BlockSpec((KH, KW, Cin, Ct), lambda n: (0, 0, 0, 0)),
            pl.BlockSpec((1, Ct), lambda n: (0, 0)),
        ],
        out_specs=pl.BlockSpec((1, Ho, Wo, Cout), lambda n: (n, 0, 0, 0)),
        compiler_params=pltpu.CompilerParams(dimension_semantics=("parallel",)),
    )(x, w, b)
    return jnp.transpose(out_nhwc, (0, 3, 1, 2))


# ---------------------------------------------------------------------------
# Public wrapper: PyTorch-style NCHW in, NCHW out.
# ---------------------------------------------------------------------------
def lwgated_conv2d(x_nchw, w_feat, b_feat, w_mask, b_mask, *, stride, pad,
                   mxu_dtype=None):
    """Pallas implementation of LWGatedConv2D.forward.

    x_nchw: (N, Cin, H, W)
    w_feat: (Cout, Cin, KH, KW), b_feat: (Cout,)
    w_mask: (1,    Cin, KH, KW), b_mask: (1,)
    mxu_dtype: optional operand dtype for the MXU matmul (e.g. jnp.bfloat16 on
               v6e/v7x); accumulation stays f32. None keeps f32 operands.
    returns (N, Cout, Ho, Wo) NCHW, matching the PyTorch module.
    """
    N, Cin, H, W = x_nchw.shape
    Cout, _, KH, KW = w_feat.shape
    Ho = (H + 2 * pad - KH) // stride + 1
    Wo = (W + 2 * pad - KW) // stride + 1
    Hp, Wp = H + 2 * pad, W + 2 * pad
    Ct = Cout + 1

    if stride != 1:
        return _lwgated_conv2d_general(x_nchw, w_feat, b_feat, w_mask, b_mask,
                                       stride=stride, pad=pad)

    KK = KH * KW * Cin               # fused contraction depth
    L = (Ho - 1) * Wp + Wo           # overshoot spatial extent (fits inside Hp*Wp)

    # Pad spatially in NCHW and flatten (free, contiguous) -> (N, Cin, Hp*Wp).
    xf = jnp.pad(x_nchw, ((0, 0), (0, 0), (pad, pad), (pad, pad)))
    xf = xf.reshape(N, Cin, Hp * Wp)

    # Pack feature + mask weights as (Cout+1, KH*KW*Cin), tap-major to match the
    # in-kernel patch assembly order (kh, kw, cin). Bias as a (Cout+1, 1) column.
    wf = jnp.transpose(w_feat, (0, 2, 3, 1)).reshape(Cout, KK)
    wm = jnp.transpose(w_mask, (0, 2, 3, 1)).reshape(1, KK)
    w2 = jnp.concatenate([wf, wm], axis=0).astype(jnp.float32)
    b2 = jnp.concatenate([b_feat, b_mask]).astype(jnp.float32)[:, None]

    kernel = functools.partial(_lwgated_kernel_s1, KH=KH, KW=KW, Wp=Wp,
                               Cout=Cout, mxu_dtype=mxu_dtype)

    out_flat = pl.pallas_call(
        kernel,
        out_shape=jax.ShapeDtypeStruct((N, Cout, L), x_nchw.dtype),
        grid=(N,),
        in_specs=[
            pl.BlockSpec((1, Cin, Hp * Wp), lambda n: (n, 0, 0)),
            pl.BlockSpec((Ct, KK), lambda n: (0, 0)),
            pl.BlockSpec((Ct, 1), lambda n: (0, 0)),
        ],
        out_specs=pl.BlockSpec((1, Cout, L), lambda n: (n, 0, 0)),
        scratch_shapes=[pltpu.VMEM((KK, L), jnp.float32)],
        compiler_params=pltpu.CompilerParams(dimension_semantics=("parallel",)),
    )(xf, w2, b2)

    # Lane p = i*Wp + j; keep only the valid j < Wo columns of each output row.
    out = jnp.pad(out_flat, ((0, 0), (0, 0), (0, Ho * Wp - L)))
    return out.reshape(N, Cout, Ho, Wp)[:, :, :, :Wo]


def _reference(x_nchw, w_feat, b_feat, w_mask, b_mask, *, stride, pad):
    dn = ("NCHW", "OIHW", "NCHW")
    feat = lax.conv_general_dilated(
        x_nchw, w_feat, (stride, stride), [(pad, pad), (pad, pad)],
        dimension_numbers=dn) + b_feat[None, :, None, None]
    mask = lax.conv_general_dilated(
        x_nchw, w_mask, (stride, stride), [(pad, pad), (pad, pad)],
        dimension_numbers=dn) + b_mask[None, :, None, None]
    return feat * jax.nn.sigmoid(mask)


if __name__ == "__main__":
    # Module config: LWGatedConv2D(input_channel1=4, output_channel=8,
    #                              pad=1, kernel_size=3, stride=1)
    N, Cin, H, W = 2, 4, 16, 16
    Cout, K, pad, stride = 8, 3, 1, 1

    key = jax.random.PRNGKey(0)
    kx, kwf, kbf, kwm, kbm = jax.random.split(key, 5)
    x = jax.random.normal(kx, (N, Cin, H, W), jnp.float32)
    w_feat = jax.random.normal(kwf, (Cout, Cin, K, K), jnp.float32) * 0.1
    b_feat = jax.random.normal(kbf, (Cout,), jnp.float32) * 0.1
    w_mask = jax.random.normal(kwm, (1, Cin, K, K), jnp.float32) * 0.1
    b_mask = jax.random.normal(kbm, (1,), jnp.float32) * 0.1

    out = lwgated_conv2d(x, w_feat, b_feat, w_mask, b_mask, stride=stride, pad=pad)
    out = jax.block_until_ready(out)

    ref = _reference(x, w_feat, b_feat, w_mask, b_mask, stride=stride, pad=pad)
    assert out.shape == (N, Cout, H, W), out.shape
    assert jnp.allclose(out, ref, atol=1e-4, rtol=1e-4), \
        float(jnp.max(jnp.abs(out - ref)))
    print("KERNEL_OK")
</pallas_src>

<mosaic_0001>
module attributes {stable_mosaic.version = 11 : i64} {
  func.func @_lwgated_kernel_s1(%arg0: i32, %arg1: memref<1x4x324xf32, #tpu.memory_space<vmem>>, %arg2: memref<9x36xf32, #tpu.memory_space<vmem>>, %arg3: memref<9x1xf32, #tpu.memory_space<vmem>>, %arg4: memref<1x8x286xf32, #tpu.memory_space<vmem>>, %arg5: memref<36x286xf32, #tpu.memory_space<vmem>>) attributes {dimension_semantics = [#tpu.dimension_semantics<parallel>], iteration_bounds = array<i64: 2>, scalar_prefetch = 0 : i64, scratch_operands = 1 : i64, tpu.core_type = #tpu.core_type<tc>, window_params = [{transform_indices = @transform_0, window_bounds = array<i64: 1, 4, 324>}, {pipeline_mode = #tpu.pipeline_mode<synchronous>, transform_indices = @transform_1, window_bounds = array<i64: 9, 36>}, {pipeline_mode = #tpu.pipeline_mode<synchronous>, transform_indices = @transform_2, window_bounds = array<i64: 9, 1>}, {transform_indices = @transform_3, window_bounds = array<i64: 1, 8, 286>}]} {
    %c0 = arith.constant 0 : index
    %c0_0 = arith.constant 0 : index
    %c0_1 = arith.constant 0 : index
    %0 = vector.load %arg1[%c0, %c0_0, %c0_1] : memref<1x4x324xf32, #tpu.memory_space<vmem>>, vector<1x4x286xf32>
    %1 = vector.shape_cast %0 : vector<1x4x286xf32> to vector<4x286xf32>
    %c0_2 = arith.constant 0 : index
    %c0_3 = arith.constant 0 : index
    %2 = vector.load %arg5[%c0_2, %c0_3] : memref<36x286xf32, #tpu.memory_space<vmem>>, vector<4x286xf32>
    tpu.vector_store %arg5[%c0_2, %c0_3], %1 {strides = array<i32>} : memref<36x286xf32, #tpu.memory_space<vmem>>, vector<4x286xf32>,
    %c0_4 = arith.constant 0 : index
    %c0_5 = arith.constant 0 : index
    %c1 = arith.constant 1 : index
    %3 = vector.load %arg1[%c0_4, %c0_5, %c1] : memref<1x4x324xf32, #tpu.memory_space<vmem>>, vector<1x4x286xf32>
    %4 = vector.shape_cast %3 : vector<1x4x286xf32> to vector<4x286xf32>
    %c4 = arith.constant 4 : index
    %c0_6 = arith.constant 0 : index
    %5 = vector.load %arg5[%c4, %c0_6] : memref<36x286xf32, #tpu.memory_space<vmem>>, vector<4x286xf32>
    tpu.vector_store %arg5[%c4, %c0_6], %4 {strides = array<i32>} : memref<36x286xf32, #tpu.memory_space<vmem>>, vector<4x286xf32>,
    %c0_7 = arith.constant 0 : index
    %c0_8 = arith.constant 0 : index
    %c2 = arith.constant 2 : index
    %6 = vector.load %arg1[%c0_7, %c0_8, %c2] : memref<1x4x324xf32, #tpu.memory_space<vmem>>, vector<1x4x286xf32>
    %7 = vector.shape_cast %6 : vector<1x4x286xf32> to vector<4x286xf32>
    %c8 = arith.constant 8 : index
    %c0_9 = arith.constant 0 : index
    %8 = vector.load %arg5[%c8, %c0_9] : memref<36x286xf32, #tpu.memory_space<vmem>>, vector<4x286xf32>
    tpu.vector_store %arg5[%c8, %c0_9], %7 {strides = array<i32>} : memref<36x286xf32, #tpu.memory_space<vmem>>, vector<4x286xf32>,
    %c0_10 = arith.constant 0 : index
    %c0_11 = arith.constant 0 : index
    %c18 = arith.constant 18 : index
    %9 = vector.load %arg1[%c0_10, %c0_11, %c18] : memref<1x4x324xf32, #tpu.memory_space<vmem>>, vector<1x4x286xf32>
    %10 = vector.shape_cast %9 : vector<1x4x286xf32> to vector<4x286xf32>
    %c12 = arith.constant 12 : index
    %c0_12 = arith.constant 0 : index
    %11 = vector.load %arg5[%c12, %c0_12] : memref<36x286xf32, #tpu.memory_space<vmem>>, vector<4x286xf32>
    tpu.vector_store %arg5[%c12, %c0_12], %10 {strides = array<i32>} : memref<36x286xf32, #tpu.memory_space<vmem>>, vector<4x286xf32>,
    %c0_13 = arith.constant 0 : index
    %c0_14 = arith.constant 0 : index
    %c19 = arith.constant 19 : index
    %12 = vector.load %arg1[%c0_13, %c0_14, %c19] : memref<1x4x324xf32, #tpu.memory_space<vmem>>, vector<1x4x286xf32>
    %13 = vector.shape_cast %12 : vector<1x4x286xf32> to vector<4x286xf32>
    %c16 = arith.constant 16 : index
    %c0_15 = arith.constant 0 : index
    %14 = vector.load %arg5[%c16, %c0_15] : memref<36x286xf32, #tpu.memory_space<vmem>>, vector<4x286xf32>
    tpu.vector_store %arg5[%c16, %c0_15], %13 {strides = array<i32>} : memref<36x286xf32, #tpu.memory_space<vmem>>, vector<4x286xf32>,
    %c0_16 = arith.constant 0 : index
    %c0_17 = arith.constant 0 : index
    %c20 = arith.constant 20 : index
    %15 = vector.load %arg1[%c0_16, %c0_17, %c20] : memref<1x4x324xf32, #tpu.memory_space<vmem>>, vector<1x4x286xf32>
    %16 = vector.shape_cast %15 : vector<1x4x286xf32> to vector<4x286xf32>
    %c20_18 = arith.constant 20 : index
    %c0_19 = arith.constant 0 : index
    %17 = vector.load %arg5[%c20_18, %c0_19] : memref<36x286xf32, #tpu.memory_space<vmem>>, vector<4x286xf32>
    tpu.vector_store %arg5[%c20_18, %c0_19], %16 {strides = array<i32>} : memref<36x286xf32, #tpu.memory_space<vmem>>, vector<4x286xf32>,
    %c0_20 = arith.constant 0 : index
    %c0_21 = arith.constant 0 : index
    %c36 = arith.constant 36 : index
    %18 = vector.load %arg1[%c0_20, %c0_21, %c36] : memref<1x4x324xf32, #tpu.memory_space<vmem>>, vector<1x4x286xf32>
    %19 = vector.shape_cast %18 : vector<1x4x286xf32> to vector<4x286xf32>
    %c24 = arith.constant 24 : index
    %c0_22 = arith.constant 0 : index
    %20 = vector.load %arg5[%c24, %c0_22] : memref<36x286xf32, #tpu.memory_space<vmem>>, vector<4x286xf32>
    tpu.vector_store %arg5[%c24, %c0_22], %19 {strides = array<i32>} : memref<36x286xf32, #tpu.memory_space<vmem>>, vector<4x286xf32>,
    %c0_23 = arith.constant 0 : index
    %c0_24 = arith.constant 0 : index
    %c37 = arith.constant 37 : index
    %21 = vector.load %arg1[%c0_23, %c0_24, %c37] : memref<1x4x324xf32, #tpu.memory_space<vmem>>, vector<1x4x286xf32>
    %22 = vector.shape_cast %21 : vector<1x4x286xf32> to vector<4x286xf32>
    %c28 = arith.constant 28 : index
    %c0_25 = arith.constant 0 : index
    %23 = vector.load %arg5[%c28, %c0_25] : memref<36x286xf32, #tpu.memory_space<vmem>>, vector<4x286xf32>
    tpu.vector_store %arg5[%c28, %c0_25], %22 {strides = array<i32>} : memref<36x286xf32, #tpu.memory_space<vmem>>, vector<4x286xf32>,
    %c0_26 = arith.constant 0 : index
    %c0_27 = arith.constant 0 : index
    %c38 = arith.constant 38 : index
    %24 = vector.load %arg1[%c0_26, %c0_27, %c38] : memref<1x4x324xf32, #tpu.memory_space<vmem>>, vector<1x4x286xf32>
    %25 = vector.shape_cast %24 : vector<1x4x286xf32> to vector<4x286xf32>
    %c32 = arith.constant 32 : index
    %c0_28 = arith.constant 0 : index
    %26 = vector.load %arg5[%c32, %c0_28] : memref<36x286xf32, #tpu.memory_space<vmem>>, vector<4x286xf32>
    tpu.vector_store %arg5[%c32, %c0_28], %25 {strides = array<i32>} : memref<36x286xf32, #tpu.memory_space<vmem>>, vector<4x286xf32>,
    %c0_29 = arith.constant 0 : index
    %c0_30 = arith.constant 0 : index
    %27 = vector.load %arg2[%c0_29, %c0_30] : memref<9x36xf32, #tpu.memory_space<vmem>>, vector<9x36xf32>
    %c0_31 = arith.constant 0 : index
    %c0_32 = arith.constant 0 : index
    %28 = vector.load %arg5[%c0_31, %c0_32] : memref<36x286xf32, #tpu.memory_space<vmem>>, vector<36x286xf32>
    %cst = arith.constant dense<0.000000e+00> : vector<9x286xf32>
    %29 = tpu.matmul %27, %28, %cst {dimension_numbers = #tpu.dot_dimension_numbers<[1], [0], [0], [1], [0, 0, 1, 1], [], []>} : vector<9x36xf32>, vector<36x286xf32>, vector<9x286xf32> -> vector<9x286xf32>
    %c0_33 = arith.constant 0 : index
    %c0_34 = arith.constant 0 : index
    %30 = vector.load %arg3[%c0_33, %c0_34] : memref<9x1xf32, #tpu.memory_space<vmem>>, vector<9x1xf32>
    %31 = vector.broadcast %30 : vector<9x1xf32> to vector<9x286xf32>
    %32 = arith.addf %29, %31 : vector<9x286xf32>
    %33 = vector.extract_strided_slice %32 {offsets = [0, 0], sizes = [8, 286], strides = [1, 1]} : vector<9x286xf32> to vector<8x286xf32>
    %34 = vector.extract_strided_slice %32 {offsets = [8, 0], sizes = [1, 286], strides = [1, 1]} : vector<9x286xf32> to vector<1x286xf32>
    %35 = arith.negf %34 : vector<1x286xf32>
    %36 = math.exp %35 : vector<1x286xf32>
    %cst_35 = arith.constant 1.000000e+00 : f32
    %37 = vector.broadcast %cst_35 : f32 to vector<1x286xf32>
    %38 = arith.addf %37, %36 : vector<1x286xf32>
    %39 = arith.divf %37, %38 : vector<1x286xf32>
    %40 = vector.broadcast %39 : vector<1x286xf32> to vector<8x286xf32>
    %41 = arith.mulf %33, %40 : vector<8x286xf32>
    %c0_36 = arith.constant 0 : index
    %c0_37 = arith.constant 0 : index
    %c0_38 = arith.constant 0 : index
    %42 = vector.load %arg4[%c0_36, %c0_37, %c0_38] : memref<1x8x286xf32, #tpu.memory_space<vmem>>, vector<1x8x286xf32>
    %43 = vector.shape_cast %42 : vector<1x8x286xf32> to vector<8x286xf32>
    %44 = vector.shape_cast %41 : vector<8x286xf32> to vector<1x8x286xf32>
    tpu.vector_store %arg4[%c0_36, %c0_37, %c0_38], %44 {strides = array<i32>} : memref<1x8x286xf32, #tpu.memory_space<vmem>>, vector<1x8x286xf32>,
    return
  }
  func.func @transform_0(%arg0: i32) -> (i32, i32, i32) {
    %c0_i32 = arith.constant 0 : i32
    %c0_i32_0 = arith.constant 0 : i32
    %c0_i32_1 = arith.constant 0 : i32
    return %arg0, %c0_i32, %c0_i32_0 : i32, i32, i32
  }
  func.func @transform_1(%arg0: i32) -> (i32, i32) {
    %c0_i32 = arith.constant 0 : i32
    %c0_i32_0 = arith.constant 0 : i32
    %c0_i32_1 = arith.constant 0 : i32
    return %c0_i32, %c0_i32_0 : i32, i32
  }
  func.func @transform_2(%arg0: i32) -> (i32, i32) {
    %c0_i32 = arith.constant 0 : i32
    %c0_i32_0 = arith.constant 0 : i32
    %c0_i32_1 = arith.constant 0 : i32
    return %c0_i32, %c0_i32_0 : i32, i32
  }
  func.func @transform_3(%arg0: i32) -> (i32, i32, i32) {
    %c0_i32 = arith.constant 0 : i32
    %c0_i32_0 = arith.constant 0 : i32
    %c0_i32_1 = arith.constant 0 : i32
    return %arg0, %c0_i32, %c0_i32_0 : i32, i32, i32
  }
}

</mosaic_0001>

<bundles_post_ra>
// kernel: tpu_custom_call.1
= control target key start
LH: loop header
LB: loop body
LE: loop exit
PB: predicated region body
PF: predicated region fallthrough
CT: control target
= control target key end

     0   :  { %8 = vsyncpa [#allocation4], 0  ;;  %s1157_s0 = inlined_call_operand.hbm [shape: f32[2,4,324], index: 0, kind: input, shape index: {}]   ;;  %s1158_s1 = inlined_call_operand.vmem [shape: f32[9,36], index: 1, kind: input, shape index: {}]   ;;  %s1159_s2 = inlined_call_operand.vmem [shape: f32[9,1], index: 2, kind: input, shape index: {}]   ;;  %s1160_s3 = inlined_call_operand.hbm [shape: f32[2,8,286], index: 3, kind: output, shape index: {}]  }
   0x1   :  { %10 = vsyncpa [#allocation4 + $0x1], 0 }
   0x2   :  { %11 = vsyncpa [#allocation5], 0 }
   0x3   :  { %13 = vsyncpa [#allocation5 + $0x1], 0  ;;  %s946_s12 = smov 0   ;;  %s948_s13 = smov 0  }
   0x4   :  { %s950_s14 = smov 0   ;;  %s952_s15 = smov 0  }
   0x5 LB: > { %s967_s16 = sadd.s32 4294967295, %s912_s15   ;;  %s681_s17 = sadd.s32 4294967294, %s912_s15   ;;  %s912_s15 = sphi %s952_s15, %s1174_s15   ;;  %s908_s14 = sphi %s950_s14, %s1173_s14   ;;  %s904_s13 = sphi %s948_s13, %s1172_s13   ;;  %s900_s12 = sphi %s946_s12, %s1171_s12  }
   0x6   : > { %s971_s18 = sadd.s32 1, %s912_s15   ;;  %s26_s19 = sadd.s32 1, %s908_s14 }
   0x7   : > { %s23_s20 = ssub.s32 %s912_s15, %s971_s18  ;;  %p33_p0 = scmp.ne.s32.totalorder %s908_s14, %s904_s13 }
   0x8   : > { %p24_p1 = scmp.eq.s32.totalorder %s23_s20, 0  ;;  %p34_p2 = scmp.eq.s32.totalorder %s912_s15, 0 }
   0x9   : > { %p39_p3 = scmp.ne.s32.totalorder %s904_s13, %s900_s12  ;;  %p40_p4 = scmp.eq.s32.totalorder %s967_s16, 0 }
   0xa   : > { %s983_s21 = scalar_select %p24_p1, %s908_s14, %s26_s19  }
   0xb   : > { %p35_p5 = por %p34_p2, %p33_p0  ;;  %p985_p6 = por %p40_p4, %p39_p3 }
   0xc   : > { %p105_p7 = scmp.eq.s32.totalorder %s967_s16, 1  ;;  %p111_p8 = scmp.eq.s32.totalorder %s681_s17, 1 }
   0xd   : > { %p752_p10 = scmp.lt.s32.totalorder %s912_s15, 2  ;;  %s137_s25 = sand.u32 1, %s908_s14  }
   0xe   : > { %p992_p11 = por %p105_p7, %p33_p0  ;;  %p996_p12 = por %p111_p8, %p39_p3 }
   0xf   : > { %s736_s26 = smul.u32 192, %s912_s15  ;;  %p1007_p13 = pnand %p752_p10, %p35_p5 }
  0x10   : > { %s1163_s23 = scalar_select %p992_p11, 1, 0 }
  0x11   : > { %s1164_s24 = scalar_select %p996_p12, 1, 0 }
  0x12   : > { %s735_s27 = smul.u32 12, %s137_s25  ;;  %s1005_s30 = scalar_lea.hbm %s1157_s0, %s736_s26 }
  0x13   : > { %s138_s7 = scalar_lea.sflag [#allocation4], %s137_s25  ;;  %s816_s8 = scalar_lea.hbm %s1005_s30, 192 }
  0x14   : > { %s141_s5 = scalar_lea.vmem [#allocation3], %s735_s27  ;;  %p817_p2 = scmp.ne.s32.totalorder %s1005_s30, %s816_s8 }
  0x15   : > { %s149_s6 = sshll.u32 %s141_s5, 4  ;;  %p818_p3 = pneg %p1007_p13  ;;  %s1012_s6 = int_to_ptr.vmem [resolvable:$true] %s149_s6 }
  0x16   : > { %s821_s11 = scalar_lea.hbm %s1157_s0, 384  ;;  %p822_p7 = scmp.lt.u32.totalorder %s1005_s30, %s1157_s0 }
  0x17   : > { %p819_p4 = pnand %p818_p3, %p817_p2  ;;  %p823_p8 = scmp.lt.u32.totalorder %s821_s11, %s816_s8 }
  0x18   : > { %p825_p9 = scmp.lt.u32.totalorder %s816_s8, %s1005_s30 }
  0x19   : > { %p820_p5 = pneg %p819_p4  ;;  %p824_p10 = por %p823_p8, %p822_p7 }
  0x1b   : > { %p826_p0 = por %p825_p9, %p824_p10 }
  0x1d   : > { %p827_p1 = pnand %p826_p0, %p820_p5 }
  0x1f   : > { %830 = shalt.err (!%p827_p1)
}
  0x20   : > { %s831_s20 = scalar_lea.vmem %s1012_s6, 192  ;;  %s914_s25 = smov [#allocation3]  }
  0x21   : > { %p832_p2 = scmp.ne.s32.totalorder %s1012_s6, %s831_s20  ;;  %s836_s26 = sshll.u32 %s914_s25, 4  ;;  %s837_s26 = int_to_ptr.vmem [resolvable:$false] %s836_s26 }
  0x22   : > { %s838_s27 = scalar_lea.vmem %s837_s26, 384  ;;  %p839_p11 = scmp.lt.s32.totalorder %s1012_s6, %s837_s26 }
  0x23   : > { %p834_p4 = pnand %p832_p2, %p818_p3  ;;  %p840_p7 = scmp.lt.s32.totalorder %s838_s27, %s831_s20 }
  0x25   : > { %p835_p12 = pneg %p834_p4  ;;  %p841_p8 = por %p840_p7, %p839_p11 }
  0x27   : > { %p842_p9 = pnand %p841_p8, %p835_p12 }
  0x29   : > { %845 = shalt.err (!%p842_p9)
}
  0x2a   : > { %747 = dma.hbm_to_vmem [thread:$0]  (!%p1007_p13), %s1005_s30, 192, %s1012_s6, %s138_s7  }
  0x2b   : > { %p1166_p0 = scmp.lt.s32.totalorder %s912_s15, 3  ;;  %p1167_p1 = scmp.ge.s32.totalorder %s912_s15, 1 }
  0x2d   : > { %p155_p3 = pnand %p1167_p1, %p1166_p0 }
  0x2e   : > { %s1045_s28 = sand.u32 (!%p155_p3), 1, %s904_s13  }
  0x2f   : > { %158 = sbr.rel (%p155_p3) target bundleno = 490 (0x1ea), region = 32  ;;  %s161_s5 = scalar_lea.sflag (!%p155_p3), [#allocation4], %s1045_s28 }
  0x30   : > { %s737_s29 = smul.u32 (!%p155_p3), 12, %s1045_s28 }
  0x32   : > { %s1049_s8 = scalar_lea.vmem (!%p155_p3), [#allocation3], %s737_s29 }
  0x36   : > { %891 = dma.done.wait (%p985_p6), %s161_s5, 192  }
  0x37   : > { %893 = vsyncadd (%p985_p6), %s161_s5, 4294967104  ;;  %v219_v0 = vld [vmem:[%s1049_s8 + $0x8] sm:$0xf]  ;;  %v196_v1 = vld [vmem:[%s1049_s8] sm:$0xff]  ;;  %s915_s30 = smov 126   ;;  %s916_s4 = smov 127  }
  0x38   : > { %227 = vrot.lane.b32.xlu1 %v219_v0, %s915_s30  ;;  %204 = vrot.lane.b32.xlu0 %v196_v1, %s916_s4  ;;  %v222_v2 = vcombine.high %v196_v1, %v196_v1  ;;  %192 = vst [vmem:[#allocation2] sm:$0xf] %v196_v1  ;;  %vm194_vm0 = vcmask 240640   ;;  %v188_v3 = vld [vmem:[%s1049_s8 + $0x8] sm:$0xf]  ;;  %s917_s22 = smov 110   ;;  %v200_v6 = vcombine.low %v196_v1, %v196_v1 }
  0x39   : > { %v800_v4 = vld [vmem:[%s1049_s8 + $0x8] ss:$0 sps:$4 sm:$0xff]   ;;  %195 = vst.msk [vmem:[#allocation2 + $0x10] sm:$0xf] %vm194_vm0, %v188_v3  ;;  %s918_s6 = smov 109   ;;  %s919_s7 = smov 108  }
  0x3a   : > { %193 = vst [vmem:[#allocation2 + $0x8] sm:$0xf] %v222_v2  ;;  %v801_v5 = vld [vmem:[%s1049_s8 + $0x8] ss:$0 sps:$4 sm:$0xff]   ;;  %s920_s9 = smov 92   ;;  %s921_s10 = smov 91  }
  0x3b   : > { %v260_v7 = vld [vmem:[%s1049_s8 + $0x8] sm:$0xf]  ;;  %vm390_vm1 = vcmask 293888   ;;  %s922_s19 = smov 90   ;;  %v923_v13 = vmov 0.0   ;;  %v924_v16 = vmov 0  }
  0x3c   : > { %225 = vrot.lane.b32.xlu1 %v222_v2, %s915_s30  ;;  %246 = vrot.lane.b32.xlu0 %v196_v1, %s917_s22  ;;  %v802_v8 = vld [vmem:[%s1049_s8 + $0x8] ss:$0 sps:$4 sm:$0xff]   ;;  %v379_v14 = vld [vmem:[%s1159_s2 + $0x8] sm:$0x1]  ;;  %vm229_vm2 = vcmask 1031168   ;;  %vm216_vm3 = vcmask 244740  }
  0x3d   : > { %v301_v9 = vld [vmem:[%s1049_s8 + $0x8] sm:$0xf]  ;;  %471 = vmatprep.mubr.f32.mxu0 %v923_v13  ;;  %796 = vset.pattern.permute.xlu0 %v924_v16  ;;  %vm250_vm4 = vcmask 900096   ;;  %vm208_vm5 = vcmask 1039360   ;;  %vm270_vm6 = vcmask 891904   ;;  %vm291_vm7 = vcmask 883712  }
  0x3e   : > { %v803_v10 = vld [vmem:[%s1049_s8 + $0x8] ss:$0 sps:$4 sm:$0xff]   ;;  %797 = vset.pattern.permute.xlu1 %v924_v16  ;;  %vm311_vm8 = vcmask 752640   ;;  %vm332_vm9 = vcmask 744448   ;;  %vm352_vm10 = vcmask 736256   ;;  %vm397_vm11 = vcmask 1043456  }
  0x3f   : > { %v1068_v11 = vld [vmem:[%s1158_s1] sm:$0xff]  ;;  %vm594_vm12 = vcmask 244736   ;;  %p1168_p11 = scmp.ne.s32.totalorder %s1163_s23, 0  ;;  %s925_s11 = smov [#allocation6]  }
  0x40   : > { %248 = vrot.lane.b32.xlu1 %v800_v4, %s917_s22  ;;  %206 = vrot.lane.b32.xlu0 %v801_v5, %s916_s4  ;;  %v342_v12 = vld [vmem:[%s1049_s8 + $0x8] sm:$0xf]  ;;  %s738_s8 = smul.u32 24, %s1045_s28  ;;  %s850_s17 = sshll.u32 %s925_s11, 4  ;;  %s851_s17 = int_to_ptr.vmem [resolvable:$false] %s850_s17 }
  0x41   : > { %716 = vmatprep.mubr.msk.f32.mxu1 %vm390_vm1, %v1068_v11  ;;  %v378_v15 = vld [vmem:[%s1159_s2] sm:$0xff] }
  0x44   : > { %223 = vrot.lane.b32.xlu1 %v196_v1, %s915_s30  ;;  %202 = vrot.lane.b32.xlu0 %v200_v6, %s916_s4  ;;  %s186_s30 = scalar_lea.vmem [#allocation6], %s738_s8  ;;  %s739_s4 = smul.u32 384, %s967_s16 }
  0x45   : > { %s597_s16 = scalar_lea.sflag [#allocation5], %s1045_s28 }
  0x48   : > { %266 = vrot.lane.b32.xlu1 %v222_v2, %s918_s6  ;;  %244 = vrot.lane.b32.xlu0 %v200_v6, %s917_s22  ;;  %s611_s22 = sshll.u32 %s186_s30, 4  ;;  %s1115_s22 = int_to_ptr.vmem [resolvable:$true] %s611_s22 }
  0x49   : > { %p853_p5 = scmp.lt.s32.totalorder %s1115_s22, %s851_s17 }
  0x4c   : > { %287 = vrot.lane.b32.xlu1 %v196_v1, %s919_s7  ;;  %268 = vrot.lane.b32.xlu0 %v260_v7, %s918_s6 }
  0x50   : > { %307 = vrot.lane.b32.xlu1 %v222_v2, %s920_s9  ;;  %289 = vrot.lane.b32.xlu0 %v802_v8, %s919_s7 }
  0x54   : > { %328 = vrot.lane.b32.xlu1 %v196_v1, %s921_s10  ;;  %309 = vrot.lane.b32.xlu0 %v301_v9, %s920_s9 }
  0x58   : > { %264 = vrot.lane.b32.xlu1 %v196_v1, %s918_s6  ;;  %330 = vrot.lane.b32.xlu0 %v803_v10, %s921_s10 }
  0x5c   : > { %305 = vrot.lane.b32.xlu1 %v196_v1, %s920_s9  ;;  %285 = vrot.lane.b32.xlu0 %v200_v6, %s919_s7  ;;  %s1113_s9 = scalar_lea.hbm %s1160_s3, %s739_s4 }
  0x60   : > { %348 = vrot.lane.b32.xlu1 %v222_v2, %s922_s19  ;;  %326 = vrot.lane.b32.xlu0 %v200_v6, %s921_s10  ;;  %s846_s10 = scalar_lea.vmem %s1115_s22, 384 }
  0x61   : > { %p847_p6 = scmp.ne.s32.totalorder %s1115_s22, %s846_s10 }
  0x63   : > { %p848_p12 = pnand %p847_p6, %p1168_p11 }
  0x64   : > { %346 = vrot.lane.b32.xlu1 %v196_v1, %s922_s19  ;;  %350 = vrot.lane.b32.xlu0 %v342_v12, %s922_s19  ;;  %s852_s19 = scalar_lea.vmem %s851_s17, 768 }
  0x65   : > { %p849_p13 = pneg %p848_p12  ;;  %p854_p10 = scmp.lt.s32.totalorder %s852_s19, %s846_s10 }
  0x67   : > { %p855_p2 = por %p854_p10, %p853_p5 }
  0x68   : > { %387 = vperm.xlu0 %796, %v379_v14   ;;  %382 = vperm.xlu1 %797, %v378_v15   ;;  %v362_v14 = vld [vmem:[%s1158_s1 + $0x8] sm:$0x1] }
  0x69   : > { %p856_p4 = pnand %p855_p2, %p849_p13 }
  0xaa   : > { %v228_v17 = vpop.permute.xlu1 %227  ;;  %v205_v18 = vpop.permute.xlu0 %204 }
  0xab   : > { %237 = vst.msk [vmem:[#allocation2 + $0x28] sm:$0xf] %vm194_vm0, %v228_v17 }
  0xae   : > { %v226_v19 = vpop.permute.xlu1 %225  ;;  %v247_v20 = vpop.permute.xlu0 %246 }
  0xaf   : > { %v231_v21 = vsel %vm229_vm2, %v226_v19, %v228_v17 }
  0xb0   : > { %236 = vst [vmem:[#allocation2 + $0x20] sm:$0xf] %v231_v21 }
  0xb2   : > { %v249_v22 = vpop.permute.xlu1 %248  ;;  %v207_v23 = vpop.permute.xlu0 %206 }
  0xb3   : > { %v252_v24 = vsel %vm250_vm4, %v247_v20, %v249_v22  ;;  %258 = vst.msk [vmem:[#allocation2 + $0x28] sm:$0xf0] %vm216_vm3, %v249_v22  ;;  %v210_v25 = vsel %vm208_vm5, %v205_v18, %v207_v23  ;;  %217 = vst.msk [vmem:[#allocation2 + $0x10] sm:$0xf0] %vm216_vm3, %v207_v23 }
  0xb4   : > { %257 = vst [vmem:[#allocation2 + $0x20] sm:$0xf0] %v252_v24  ;;  %215 = vst [vmem:[#allocation2 + $0x8] sm:$0xf0] %v210_v25 }
  0xb6   : > { %v224_v26 = vpop.permute.xlu1 %223  ;;  %v203_v27 = vpop.permute.xlu0 %202 }
  0xb7   : > { %v230_v28 = vsel %vm229_vm2, %v224_v26, %v226_v19  ;;  %v209_v29 = vsel %vm208_vm5, %v203_v27, %v205_v18 }
  0xb8   : > { %235 = vst [vmem:[#allocation2 + $0x18] sm:$0xf] %v230_v28  ;;  %214 = vst [vmem:[#allocation2] sm:$0xf0] %v209_v29 }
  0xba   : > { %v267_v30 = vpop.permute.xlu1 %266  ;;  %v245_v31 = vpop.permute.xlu0 %244  ;;  %v365_v32 = vld [vmem:[#allocation2 + $0x10] sm:$0xff]  ;;  %v368_v33 = vld [vmem:[#allocation2 + $0x28] sm:$0xff] }
  0xbb   : > { %v251_v34 = vsel %vm250_vm4, %v245_v31, %v247_v20  ;;  %v727_v35 = vpack.c.bf16 %v368_v33, %v365_v32  ;;  %v364_v36 = vld [vmem:[#allocation2 + $0x8] sm:$0xff]  ;;  %v367_v37 = vld [vmem:[#allocation2 + $0x20] sm:$0xff] }
  0xbc   : > { %256 = vst [vmem:[#allocation2 + $0x18] sm:$0xf0] %v251_v34  ;;  %v719_v38 = vpack.c.bf16 %v367_v37, %v364_v36 }
  0xbd   : > { %728 = vmatprep.subr.bf16.mxu1 %v727_v35 }
  0xbe   : > { %v288_v39 = vpop.permute.xlu1 %287  ;;  %v269_v40 = vpop.permute.xlu0 %268  ;;  %720 = vmatprep.subr.bf16.mxu0 %v719_v38  ;;  %730 = vmatpush3.bf16.msra.mxu1 %v727_v35 }
  0xbf   : > { %v272_v41 = vsel %vm270_vm6, %v267_v30, %v269_v40  ;;  %278 = vst.msk [vmem:[#allocation2 + $0x40] sm:$0xf] %vm194_vm0, %v269_v40  ;;  %v363_v45 = vld [vmem:[#allocation2] sm:$0xff] }
  0xc0   : > { %277 = vst [vmem:[#allocation2 + $0x38] sm:$0xf] %v272_v41 }
  0xc2   : > { %v308_v42 = vpop.permute.xlu1 %307  ;;  %v290_v43 = vpop.permute.xlu0 %289 }
  0xc3   : > { %v293_v44 = vsel %vm291_vm7, %v288_v39, %v290_v43  ;;  %299 = vst.msk [vmem:[#allocation2 + $0x40] sm:$0xf0] %vm216_vm3, %v290_v43  ;;  %v366_v46 = vld [vmem:[#allocation2 + $0x18] sm:$0xff] }
  0xc4   : > { %298 = vst [vmem:[#allocation2 + $0x38] sm:$0xf0] %v293_v44  ;;  %v721_v47 = vpack.c.bf16 %v366_v46, %v363_v45 }
  0xc6   : > { %v329_v48 = vpop.permute.xlu1 %328  ;;  %v310_v49 = vpop.permute.xlu0 %309  ;;  %722 = vmatpush1.bf16.msra.mxu0 %v721_v47 }
  0xc7   : > { %v313_v50 = vsel %vm311_vm8, %v308_v42, %v310_v49  ;;  %319 = vst.msk [vmem:[#allocation2 + $0x58] sm:$0xf] %vm194_vm0, %v310_v49 }
  0xc8   : > { %318 = vst [vmem:[#allocation2 + $0x50] sm:$0xf] %v313_v50 }
  0xca   : > { %v265_v51 = vpop.permute.xlu1 %264  ;;  %v331_v52 = vpop.permute.xlu0 %330  ;;  %v371_v61 = vld [vmem:[#allocation2 + $0x40] sm:$0xff] }
  0xcb   : > { %v271_v53 = vsel %vm270_vm6, %v265_v51, %v267_v30  ;;  %v334_v54 = vsel %vm332_vm9, %v329_v48, %v331_v52  ;;  %340 = vst.msk [vmem:[#allocation2 + $0x58] sm:$0xf0] %vm216_vm3, %v331_v52  ;;  %v370_v1 = vld [vmem:[#allocation2 + $0x38] sm:$0xff]  ;;  %v577_v30 = vlaneseq }
  0xcc   : > { %276 = vst [vmem:[#allocation2 + $0x30] sm:$0xf] %v271_v53  ;;  %339 = vst [vmem:[#allocation2 + $0x50] sm:$0xf0] %v334_v54 }
  0xcd   : > { %v578_v32 = vshrl.u32 %v577_v30, 7 }
  0xce   : > { %v306_v55 = vpop.permute.xlu1 %305  ;;  %v286_v56 = vpop.permute.xlu0 %285 }
  0xcf   : > { %v312_v57 = vsel %vm311_vm8, %v306_v55, %v308_v42  ;;  %v292_v58 = vsel %vm291_vm7, %v286_v56, %v288_v39  ;;  %v579_v36 = vsub.s32 0, %v578_v32 }
  0xd0   : > { %317 = vst [vmem:[#allocation2 + $0x48] sm:$0xf] %v312_v57  ;;  %297 = vst [vmem:[#allocation2 + $0x30] sm:$0xf0] %v292_v58 }
  0xd2   : > { %v349_v59 = vpop.permute.xlu1 %348  ;;  %v327_v60 = vpop.permute.xlu0 %326  ;;  %v374_v62 = vld [vmem:[#allocation2 + $0x58] sm:$0xff] }
  0xd3   : > { %v333_v63 = vsel %vm332_vm9, %v327_v60, %v329_v48  ;;  %v731_v0 = vpack.c.bf16 %v374_v62, %v371_v61  ;;  %v373_v2 = vld [vmem:[#allocation2 + $0x50] sm:$0xff] }
  0xd4   : > { %338 = vst [vmem:[#allocation2 + $0x48] sm:$0xf0] %v333_v63  ;;  %v723_v3 = vpack.c.bf16 %v373_v2, %v370_v1 }
  0xd5   : > { %732 = vmatprep.subr.bf16.mxu1 %v731_v0 }
  0xd6   : > { %v347_v4 = vpop.permute.xlu1 %346  ;;  %v351_v5 = vpop.permute.xlu0 %350  ;;  %724 = vmatprep.subr.bf16.mxu0 %v723_v3  ;;  %734 = vmatpush3.bf16.msra.mxu1 %v731_v0 }
  0xd7   : > { %v353_v6 = vsel %vm352_vm10, %v347_v4, %v349_v59  ;;  %v354_v7 = vsel %vm352_vm10, %v349_v59, %v351_v5  ;;  %360 = vst.msk [vmem:[#allocation2 + $0x70] sm:$0xf] %vm194_vm0, %v351_v5  ;;  %v369_v8 = vld [vmem:[#allocation2 + $0x30] sm:$0xff] }
  0xd8   : > { %358 = vst [vmem:[#allocation2 + $0x60] sm:$0xf] %v353_v6  ;;  %359 = vst [vmem:[#allocation2 + $0x68] sm:$0xf] %v354_v7 }
  0xdb   : > { %v372_v9 = vld [vmem:[#allocation2 + $0x48] sm:$0xff] }
  0xdc   : > { %v725_v10 = vpack.c.bf16 %v372_v9, %v369_v8 }
  0xde   : > { %726 = vmatpush1.bf16.msra.mxu0 %v725_v10  ;;  %v377_v12 = vld [vmem:[#allocation2 + $0x70] sm:$0xf] }
  0xdf   : > { %714 = vmatprep.subr.msk.mxu1 %vm397_vm11, %v377_v12  ;;  %v376_v15 = vld [vmem:[#allocation2 + $0x68] sm:$0xf]  ;;  %v375_v16 = vld [vmem:[#allocation2 + $0x60] sm:$0xf] }
  0xe0   : > { %686 = vmatprep.subr.msk.mxu0 %vm397_vm11, %v376_v15  ;;  %715 = vmatpush3.msk.msra.mxu1 %vm397_vm11, %v377_v12 }
  0xe1   : > { %717 = vmatmul.mubr.msk.f32.vlgmr.msra.gmra.mrb[0].mxu1 %vm390_vm1, %v362_v14 }
  0xe2   : > { %687 = vmatpush1.msk.msra.mxu0 %vm397_vm11, %v375_v16 }
  0xe3   : > { %688 = vmatmul.mubr.msk.f32.vlgmr.msra.gmra.mrb[0].mxu0 %vm390_vm1, %v1068_v11 }
  0xe4   : > { %477 = vmatprep.mubr.f32.mxu0 %v923_v13 }
  0xe7   : > { %689 = vmatmul.mubr.msk.f32.gmra.mrb[2].mxu0 %vm390_vm1, %v362_v14  ;;  %v388_v17 = vpop.permute.xlu0 %387  ;;  %v383_v38 = vpop.permute.xlu1 %382 }
 0x1b4   : > { %v718_v18 = vpop.f32.mrb[0].mxu1 }
 0x1b5   : > { %v556_v19 = vadd.f32 %v718_v18, %v388_v17  ;;  %v550_v20 = vpop.f32.mrb[1].mxu1 }
 0x1b6   : > { %v473_v21 = vpop.f32.mrb[0].mxu0  ;;  %v551_v39 = vadd.f32 %v550_v20, %v383_v38 }
 0x1b7   : > { %v695_v22 = vmul.f32 -1.442695, %v556_v19  ;;  %v475_v23 = vpop.f32.mrb[1].mxu0  ;;  %v474_v44 = vadd.f32 %v473_v21, %v383_v38 }
 0x1b8   : > { %v476_v46 = vadd.f32 %v475_v23, %v383_v38 }
 0x1b9   : > { %804 = vpow2.f32 %v695_v22 }
 0x1ba   : > { %v479_v24 = vpop.f32.mrb[2].mxu0 }
 0x1bb   : > { %v480_v25 = vadd.f32 %v479_v24, %v388_v17  ;;  %v481_v26 = vpop.f32.mrb[3].mxu0 }
 0x1bc   : > { %v482_v27 = vadd.f32 %v481_v26, %v388_v17 }
 0x1bd   : > { %v693_v28 = vmul.f32 -1.442695, %v480_v25 }
 0x1be   : > { %v694_v29 = vmul.f32 -1.442695, %v482_v27 }
 0x1bf   : > { %806 = vpow2.f32 %v693_v28 }
 0x1c0   : > { %808 = vpow2.f32 %v694_v29 }
 0x1c3   : > { %v805_v11 = vpop.eup %804 }
 0x1c4   : > { %v570_v13 = vadd.f32 1.0, %v805_v11 }
 0x1c6   : > { %810 = vrcp.f32 %v570_v13 }
 0x1c9   : > { %v807_v31 = vpop.eup %806 }
 0x1ca   : > { %v809_v33 = vpop.eup %808  ;;  %v568_v34 = vadd.f32 1.0, %v807_v31 }
 0x1cb   : > { %v569_v35 = vadd.f32 1.0, %v809_v33 }
 0x1cc   : > { %812 = vrcp.f32 %v568_v34 }
 0x1cd   : > { %814 = vrcp.f32 %v569_v35 }
 0x1d0   : > { %v811_v37 = vpop.eup %810 }
 0x1d1   : > { %v588_v40 = vrot.slane %v811_v37, %v579_v36 }
 0x1d3   : > { %v591_v41 = vmul.f32 %v588_v40, %v551_v39 }
 0x1d5   : > { %595 = vst.msk [vmem:[%s186_s30 + $0x10] sm:$0xff] %vm594_vm12, %v591_v41 }
 0x1d6   : > { %v813_v42 = vpop.eup %812 }
 0x1d7   : > { %v815_v43 = vpop.eup %814  ;;  %v580_v45 = vrot.slane %v813_v42, %v579_v36 }
 0x1d8   : > { %v584_v47 = vrot.slane %v815_v43, %v579_v36 }
 0x1d9   : > { %v589_v48 = vmul.f32 %v580_v45, %v474_v44 }
 0x1da   : > { %v590_v49 = vmul.f32 %v584_v47, %v476_v46 }
 0x1db   : > { %592 = vst [vmem:[%s186_s30] sm:$0xff] %v589_v48 }
 0x1dc   : > { %593 = vst [vmem:[%s186_s30 + $0x8] sm:$0xff] %v590_v49 }
 0x1dd   : > { %859 = shalt.err (!%p856_p4)
}
 0x1de   : > { %s860_s28 = scalar_lea.hbm %s1113_s9, 384  ;;  %s864_s26 = scalar_lea.hbm %s1160_s3, 768 }
 0x1df   : > { %p861_p7 = scmp.ne.s32.totalorder %s1113_s9, %s860_s28  ;;  %p865_p0 = scmp.lt.u32.totalorder %s1113_s9, %s1160_s3 }
 0x1e0   : > { %p866_p1 = scmp.lt.u32.totalorder %s864_s26, %s860_s28  ;;  %p868_p6 = scmp.lt.u32.totalorder %s860_s28, %s1113_s9 }
 0x1e1   : > { %p862_p8 = pnand %p861_p7, %p1168_p11 }
 0x1e2   : > { %p867_p3 = por %p866_p1, %p865_p0 }
 0x1e3   : > { %p863_p9 = pneg %p862_p8 }
 0x1e4   : > { %p869_p12 = por %p868_p6, %p867_p3 }
 0x1e6   : > { %p870_p13 = pnand %p869_p12, %p863_p9 }
 0x1e8   : > { %873 = shalt.err (!%p870_p13)
}
 0x1e9   : > { %742 = dma.vmem_to_hbm [thread:$0]  (%p1168_p11), %s1115_s22, 384, %s1113_s9, %s597_s16  }
 0x1ea PF: > { %s623_s5 = sand.u32 1, %s900_s12   ;;  %p1169_p5 = scmp.ne.s32.totalorder %s1164_s24, 0 }
 0x1eb   : > { %p1170_p10 = scmp.ge.s32.totalorder %s912_s15, 2  ;;  %s624_s8 = scalar_lea.sflag [#allocation5], %s623_s5 }
 0x1ed   : > { %p749_p2 = pnand %p1170_p10, %p1169_p5 }
 0x1ef   : > { %895 = dma.done.wait (!%p749_p2), %s624_s8, 384  }
 0x1f0   : > { %897 = vsyncadd (!%p749_p2), %s624_s8, 4294966912  ;;  %p16_p4 = scmp.ge.s32.totalorder %s971_s18, 4   ;;  %s1171_s12 = smov %s904_s13 }
 0x1f1   : > { %s1172_s13 = smov %s908_s14  ;;  %s1173_s14 = smov %s983_s21 }
 0x1f2   : > { %s1174_s15 = smov %s971_s18  ;;  %18 = sbr.rel (!%p16_p4) target bundleno = 5 (0x5), region = 77 }
 0x1f9   :  { %629 = vsyncpa [#allocation4], 1 }
 0x1fa   :  { %631 = vsyncpa [#allocation4 + $0x1], 1 }
 0x1fb   :  { %632 = vsyncpa [#allocation5], 1 }
 0x1fc   :  { %634 = vsyncpa [#allocation5 + $0x1], 1 }

</bundles_post_ra>
